<compile_context>
chip_gen: v7x
topology: tpu7x:2x2x1
jax: 0.10.0
libtpu: 0.0.40
codegen_flags: <defaults>
</compile_context>

<pallas_src>
import math

import jax
import jax.numpy as jnp
import numpy as np
from jax.experimental import pallas as pl
from jax.experimental.pallas import tpu as pltpu


def _reshape_copy_kernel(x_ref, o_ref):
    # x_ref / o_ref: (TB, TN) lane-dense tiles.  The "reshape" itself is pure
    # metadata handled in the wrapper; the kernel is a straight VMEM copy.
    o_ref[...] = x_ref[...]


def _ceil_div(a, b):
    return -(-a // b)


def _tpu_vmem_and_cores():
    """(physical VMEM bytes per TensorCore, #TensorCores sharing a 'parallel' axis)."""
    vmem_bytes = 64 << 20  # conservative lower bound (v7x per-TC VMEM)
    num_cores = 1
    try:
        info = pltpu.get_tpu_info()
        vmem_bytes = int(getattr(info, "vmem_capacity_bytes", vmem_bytes))
    except Exception:
        pass
    vmem_bytes = max(32 << 20, min(vmem_bytes, 128 << 20))
    try:
        kind = jax.devices()[0].device_kind.lower()
        # Chips where a "parallel" grid axis is sharded across 2 TensorCores.
        if any(tag in kind for tag in ("v4", "v5p", "v7")):
            num_cores = 2
    except Exception:
        pass
    return vmem_bytes, num_cores


def _pick_tiles(B, N, itemsize, block_budget, num_cores):
    """Pick a (tb, tn) block: lane-dense, dtype-aware sublane alignment,
    VMEM-bounded, and (on dual-TC chips) an even grid-step split."""
    row_align = 8 * max(1, 4 // itemsize)  # 8 rows f32, 16 bf16, 32 int8/fp8
    row_bytes = N * itemsize

    if row_bytes <= block_budget:
        # Full rows fit: tile over the batch only (tn = N keeps stores unmasked).
        tn = N
        max_tb = max(1, block_budget // row_bytes)
        if B <= max_tb and (num_cores <= 1 or B < 2 * row_align):
            # Single-core chip (or batch too small to split legally): one
            # full-batch block is strictly fastest for a mem-bound copy.
            return B, tn
        steps = _ceil_div(B, min(B, max_tb))
        if num_cores > 1 and B >= num_cores * row_align:
            steps = max(steps, num_cores)
            steps = _ceil_div(steps, num_cores) * num_cores  # even per-core split
        tb = _ceil_div(B, steps)
        tb = max(row_align, (tb // row_align) * row_align)
        return min(tb, B), tn

    # Wide row: a single row exceeds the block budget — block the feature axis
    # too, in lane-dense multiples of 128, so we never exceed scoped VMEM.
    tb = min(B, row_align)
    tn = max(128, ((block_budget // (tb * itemsize)) // 128) * 128)
    tn = min(tn, N)
    return tb, tn


def reshape_forward(x, outer_shape):
    """Pallas equivalent of `x.view(x.size(0), *outer_shape)`."""
    outer_shape = tuple(int(d) for d in outer_shape)
    B = x.shape[0]
    n_in = math.prod(x.shape[1:])
    n_out = math.prod(outer_shape)
    assert n_in == n_out, (
        f"reshape must preserve per-row element count: {x.shape[1:]} vs {outer_shape}"
    )
    N = n_in
    itemsize = jnp.dtype(x.dtype).itemsize

    # Wrapper-side layout plumbing only (free metadata): lane-dense (B, N) slab.
    x2 = x.reshape(B, N)

    vmem_bytes, num_cores = _tpu_vmem_and_cores()
    # Footprint = 2 arrays x 2 pipeline buffers x block; keep total <= ~5/8 VMEM.
    total_budget = (vmem_bytes * 5) // 8          # 40 MiB on v7x, 80 MiB on v5e/v6e
    block_budget = total_budget // 4
    tb, tn = _pick_tiles(B, N, itemsize, block_budget, num_cores)

    # Raise the scoped-VMEM limit to match the tile sizing (never above physical).
    vmem_limit = int(min(vmem_bytes - (4 << 20), total_budget + (8 << 20)))

    grid = (pl.cdiv(B, tb), pl.cdiv(N, tn))

    out2 = pl.pallas_call(
        _reshape_copy_kernel,
        out_shape=jax.ShapeDtypeStruct((B, N), x.dtype),
        grid_spec=pltpu.PrefetchScalarGridSpec(
            num_scalar_prefetch=0,
            grid=grid,
            in_specs=[pl.BlockSpec((tb, tn), lambda i, j: (i, j))],
            out_specs=pl.BlockSpec((tb, tn), lambda i, j: (i, j)),
        ),
        compiler_params=pltpu.CompilerParams(
            dimension_semantics=("parallel", "parallel"),
            vmem_limit_bytes=vmem_limit,
        ),
        cost_estimate=pl.CostEstimate(
            flops=0, transcendentals=0, bytes_accessed=2 * B * N * itemsize
        ),
        # TODO(synk): if the caller donates x, add input_output_aliases={0: 0}
        # (or skip the pallas_call and return x.reshape(...)) so the reshape is
        # pure metadata and no HBM traffic is spent at all.
    )(x2)

    # Free metadata reshape back to the module's output shape.
    return out2.reshape((B,) + outer_shape)


def _reference(x, outer_shape):
    return x.reshape((x.shape[0],) + tuple(outer_shape))


if __name__ == "__main__":
    # Small shapes consistent with the module: x.view(x.size(0), *outer_shape).
    B, C, H, W = 2, 4, 16, 16            # per-row element count = 1024
    outer_shape = (8, 128)               # 8 * 128 == 4 * 16 * 16

    key = jax.random.PRNGKey(0)
    x = jax.random.normal(key, (B, C, H, W), jnp.float32)

    out = reshape_forward(x, outer_shape)
    out = jax.block_until_ready(out)

    ref = _reference(x, outer_shape)
    assert out.shape == (B,) + outer_shape, out.shape
    np.testing.assert_allclose(np.asarray(out), np.asarray(ref), rtol=0, atol=0)

    print("KERNEL_OK")
</pallas_src>

<mosaic_0001>
module attributes {stable_mosaic.version = 11 : i64} {
  func.func @_reshape_copy_kernel(%arg0: i32, %arg1: i32, %arg2: memref<2x1024xf32, #tpu.memory_space<vmem>>, %arg3: memref<2x1024xf32, #tpu.memory_space<vmem>>) attributes {dimension_semantics = [#tpu.dimension_semantics<parallel>, #tpu.dimension_semantics<parallel>], iteration_bounds = array<i64: 1, 1>, scalar_prefetch = 0 : i64, scratch_operands = 0 : i64, tpu.core_type = #tpu.core_type<tc>, window_params = [{transform_indices = @transform_0, window_bounds = array<i64: 2, 1024>}, {transform_indices = @transform_1, window_bounds = array<i64: 2, 1024>}]} {
    %c0 = arith.constant 0 : index
    %c0_0 = arith.constant 0 : index
    %0 = vector.load %arg2[%c0, %c0_0] : memref<2x1024xf32, #tpu.memory_space<vmem>>, vector<2x1024xf32>
    %c0_1 = arith.constant 0 : index
    %c0_2 = arith.constant 0 : index
    %1 = vector.load %arg3[%c0_1, %c0_2] : memref<2x1024xf32, #tpu.memory_space<vmem>>, vector<2x1024xf32>
    tpu.vector_store %arg3[%c0_1, %c0_2], %0 {strides = array<i32>} : memref<2x1024xf32, #tpu.memory_space<vmem>>, vector<2x1024xf32>,
    return
  }
  func.func @transform_0(%arg0: i32, %arg1: i32) -> (i32, i32) {
    %c0_i32 = arith.constant 0 : i32
    return %arg0, %arg1 : i32, i32
  }
  func.func @transform_1(%arg0: i32, %arg1: i32) -> (i32, i32) {
    %c0_i32 = arith.constant 0 : i32
    return %arg0, %arg1 : i32, i32
  }
}

</mosaic_0001>

<bundles_post_ra>
// kernel: tpu_custom_call.1
= control target key start
LH: loop header
LB: loop body
LE: loop exit
PB: predicated region body
PF: predicated region fallthrough
CT: control target
= control target key end

     0   :  { %6 = vsyncpa [#allocation3], 0  ;;  %s126_s0 = inlined_call_operand.hbm [shape: f32[2,1024], index: 0, kind: input, shape index: {}]   ;;  %s127_s1 = inlined_call_operand.hbm [shape: f32[2,1024], index: 1, kind: output, shape index: {}]  }
   0x1   :  { %7 = vsyncpa [#allocation4], 0  ;;  %s90_s6 = smov [#allocation2]   ;;  %s42_s10 = scalar_lea.hbm %s126_s0, 256 }
   0x2   :  { %s14_s7 = sshll.u32 %s90_s6, 4  ;;  %p43_p0 = scmp.ne.s32.totalorder %s126_s0, %s42_s10  ;;  %s15_s7 = int_to_ptr.vmem [resolvable:$true] %s14_s7 }
   0x3   :  { %p46_p1 = scmp.lt.u32.totalorder %s42_s10, %s126_s0 }
   0x5   :  { %p48_p2 = pnand %p46_p1, %p43_p0 }
   0x7   :  { %51 = shalt.err (!%p48_p2)
}
   0x8   :  { %s52_s15 = scalar_lea.vmem %s15_s7, 256  ;;  %p57_p4 = scmp.lt.s32.totalorder %s15_s7, %s15_s7 }
   0x9   :  { %p53_p3 = scmp.ne.s32.totalorder %s15_s7, %s52_s15  ;;  %p58_p5 = scmp.lt.s32.totalorder %s52_s15, %s52_s15 }
   0xb   :  { %p59_p6 = por %p58_p5, %p57_p4 }
   0xd   :  { %p60_p7 = pnand %p59_p6, %p53_p3 }
   0xf   :  { %63 = shalt.err (!%p60_p7)
}
  0x10   :  { %17 = dma.hbm_to_vmem [thread:$0]  %s126_s0, 256, %s15_s7, [#allocation3]  }
  0x11   :  { %86 = dma.done.wait [#allocation3], 256  }
  0x12   :  { %87 = vsyncadd [#allocation3], 4294967040  ;;  %s91_s18 = smov [#allocation5]   ;;  %v21_v0 = vld [vmem:[#allocation2] sm:$0xff]  ;;  %v22_v1 = vld [vmem:[#allocation2 + $0x8] sm:$0xff] }
  0x13   :  { %s31_s19 = sshll.u32 %s91_s18, 4  ;;  %23 = vst [vmem:[#allocation5] sm:$0xff] %v21_v0  ;;  %24 = vst [vmem:[#allocation5 + $0x8] sm:$0xff] %v22_v1  ;;  %s32_s19 = int_to_ptr.vmem [resolvable:$true] %s31_s19 }
  0x14   :  { %s64_s20 = scalar_lea.vmem %s32_s19, 256  ;;  %p69_p9 = scmp.lt.s32.totalorder %s32_s19, %s32_s19 }
  0x15   :  { %p65_p8 = scmp.ne.s32.totalorder %s32_s19, %s64_s20  ;;  %p70_p10 = scmp.lt.s32.totalorder %s64_s20, %s64_s20 }
  0x17   :  { %p71_p11 = por %p70_p10, %p69_p9 }
  0x19   :  { %p72_p12 = pnand %p71_p11, %p65_p8 }
  0x1b   :  { %75 = shalt.err (!%p72_p12)
}
  0x1c   :  { %s76_s0 = scalar_lea.hbm %s127_s1, 256 }
  0x1d   :  { %p77_p13 = scmp.ne.s32.totalorder %s127_s1, %s76_s0  ;;  %p80_p0 = scmp.lt.u32.totalorder %s76_s0, %s127_s1 }
  0x1f   :  { %p82_p1 = pnand %p80_p0, %p77_p13 }
  0x21   :  { %85 = shalt.err (!%p82_p1)
}
  0x22   :  { %34 = dma.vmem_to_hbm [thread:$0]  %s32_s19, 256, %s127_s1, [#allocation4]  }
  0x23   :  { %88 = dma.done.wait [#allocation4], 256  }
  0x24   :  { %89 = vsyncadd [#allocation4], 4294967040 }
  0x25   :  { %38 = vsyncpa [#allocation3], 1 }
  0x26   :  { %39 = vsyncpa [#allocation4], 1 }

</bundles_post_ra>
